<compile_context>
chip_gen: v5e
topology: v5e:2x2
jax: 0.10.0
libtpu: 0.0.40
codegen_flags: <defaults>
</compile_context>

<pallas_src>
import functools

import jax
import jax.numpy as jnp
from jax.experimental import pallas as pl
from jax.experimental.pallas import tpu as pltpu

H1_PAD = 128      # fc1 hidden width 64 padded to a full lane width (exact: relu(0)=0)
NEG_BIG = -1e30   # bias on padded logit lanes -> exp() underflows to exactly 0


def _round_up(n, m):
    return ((n + m - 1) // m) * m


def decoder_kernel(x_ref,
                   w1_ref, b1_ref,
                   w2_ref, b2_ref,
                   w3_ref, b3_ref,
                   w4_ref, b4_ref,
                   o_ref):
    x = x_ref[...]                       # (Bt, K) f32, K = encoded_dim (tiny)
    w1 = w1_ref[...]                     # (K, 128) f32

    # fc1: K==2 -> VPU FMAs instead of a degenerate MXU matmul.
    h = b1_ref[...]                      # (1, 128), broadcasts over batch tile
    for k in range(x.shape[1]):          # static, fully unrolled (K = encoded_dim)
        h = h + x[:, k:k + 1] * w1[k:k + 1, :]
    h = jnp.maximum(h, 0.0)              # (Bt, 128) f32; cols 64..127 are exactly 0

    # fc2 + ReLU  (bf16 MXU operands, f32 accumulation; elementwise stays f32)
    h = jnp.dot(h.astype(jnp.bfloat16), w2_ref[...],
                preferred_element_type=jnp.float32) + b2_ref[...]
    h = jnp.maximum(h, 0.0)

    # fc3 + ReLU
    h = jnp.dot(h.astype(jnp.bfloat16), w3_ref[...],
                preferred_element_type=jnp.float32) + b3_ref[...]
    h = jnp.maximum(h, 0.0)

    # fc4 -> padded logits; padded lanes carry a ~-inf bias
    logits = jnp.dot(h.astype(jnp.bfloat16), w4_ref[...],
                     preferred_element_type=jnp.float32) + b4_ref[...]

    # Numerically stable softmax over all 128 lanes (padded lanes exp() == 0).
    # Exact division (NOT approx reciprocal) so rows sum to 1 in f32 before the
    # final bf16 cast of the output tile.
    m = jnp.max(logits, axis=-1, keepdims=True)
    e = jnp.exp(logits - m)
    denom = jnp.sum(e, axis=-1, keepdims=True)
    o_ref[...] = (e / denom).astype(o_ref.dtype)


@functools.partial(jax.jit, static_argnames=("block_b",))
def decoder_forward(x, params, block_b=None):
    (w1, b1), (w2, b2), (w3, b3), (w4, b4) = params
    out_dim = w4.shape[1]
    out_pad = _round_up(out_dim, 128)     # lane-dense, unmasked output stores
    B, K = x.shape

    # ---- exact parameter padding / dtype prep (outside the kernel) ----------
    w1p = jnp.pad(w1, ((0, 0), (0, H1_PAD - w1.shape[1])))                 # f32 (VPU path)
    b1p = jnp.pad(b1, ((0, 0), (0, H1_PAD - b1.shape[1])))                 # f32
    w2p = jnp.pad(w2, ((0, H1_PAD - w2.shape[0]), (0, 0))).astype(jnp.bfloat16)
    b2p = b2                                                               # f32
    w3p = w3.astype(jnp.bfloat16)
    b3p = b3                                                               # f32
    w4p = jnp.pad(w4, ((0, 0), (0, out_pad - out_dim))).astype(jnp.bfloat16)
    b4p = jnp.pad(b4, ((0, 0), (0, out_pad - out_dim)), constant_values=NEG_BIG)

    # ---- batch tiling --------------------------------------------------------
    b8 = _round_up(B, 8)
    if block_b is None:
        # Aim for >=2 grid steps (v7x megacore sharding of the "parallel" axis)
        # while capping the tile at 2048 rows (~a few MB of live VMEM per step).
        block_b = max(8, min(2048, _round_up((b8 + 1) // 2, 8)))
    bt = _round_up(max(8, min(block_b, b8)), 8)
    bp = _round_up(B, bt)
    if bp != B:
        x = jnp.pad(x, ((0, bp - B), (0, 0)))
    grid = (bp // bt,)

    resident = lambda i: (0, 0)   # same block every step -> weights stay in VMEM

    out = pl.pallas_call(
        decoder_kernel,
        out_shape=jax.ShapeDtypeStruct((bp, out_pad), jnp.bfloat16),
        grid=grid,
        in_specs=[
            pl.BlockSpec((bt, K), lambda i: (i, 0)),
            pl.BlockSpec(w1p.shape, resident),
            pl.BlockSpec(b1p.shape, resident),
            pl.BlockSpec(w2p.shape, resident),
            pl.BlockSpec(b2p.shape, resident),
            pl.BlockSpec(w3p.shape, resident),
            pl.BlockSpec(b3p.shape, resident),
            pl.BlockSpec(w4p.shape, resident),
            pl.BlockSpec(b4p.shape, resident),
        ],
        out_specs=pl.BlockSpec((bt, out_pad), lambda i: (i, 0)),
        compiler_params=pltpu.CompilerParams(
            dimension_semantics=("parallel",),
            vmem_limit_bytes=48 * 1024 * 1024),   # v5e default (16 MiB) is the tight one
    )(x, w1p, b1p, w2p, b2p, w3p, b3p, w4p, b4p)

    # Slice away batch/lane padding; upcast the bf16 kernel output to f32.
    # TODO(synk): downstream consumers that accept the padded (bp, 128) bf16
    # buffer directly could skip this extra XLA slice pass entirely.
    return out[:B, :out_dim].astype(jnp.float32)


def init_linear(key, fan_in, fan_out):
    # Deterministic init mimicking PyTorch's default U(-1/sqrt(fan_in), 1/sqrt(fan_in)).
    kw, kb = jax.random.split(key)
    bound = 1.0 / jnp.sqrt(fan_in)
    w = jax.random.uniform(kw, (fan_in, fan_out), jnp.float32, -bound, bound)  # (in, out)
    b = jax.random.uniform(kb, (1, fan_out), jnp.float32, -bound, bound)
    return w, b


def make_params(key, encoded_dim, output_dim):
    k1, k2, k3, k4 = jax.random.split(key, 4)
    return (
        init_linear(k1, encoded_dim, 64),
        init_linear(k2, 64, 128),
        init_linear(k3, 128, 256),
        init_linear(k4, 256, output_dim),
    )


def reference_forward(x, params):
    (w1, b1), (w2, b2), (w3, b3), (w4, b4) = params
    h = jnp.maximum(x @ w1 + b1, 0.0)
    h = jnp.maximum(h @ w2 + b2, 0.0)
    h = jnp.maximum(h @ w3 + b3, 0.0)
    logits = h @ w4 + b4
    return jax.nn.softmax(logits, axis=-1)


if __name__ == "__main__":
    encoded_dim = 2
    output_dim = 10

    key = jax.random.PRNGKey(0)
    kx, kp, kx2 = jax.random.split(key, 3)
    params = make_params(kp, encoded_dim, output_dim)

    # Tolerances: fc2-4 use bf16 MXU operands (f32 accumulation) and the output
    # tile is stored as bf16, so values/row-sums are compared at 1e-2.
    TOL = 1e-2

    # Case 1: tiny batch -> single grid step.
    x = jax.random.normal(kx, (8, encoded_dim), jnp.float32)
    out = jax.block_until_ready(decoder_forward(x, params))
    ref = reference_forward(x, params)
    assert out.shape == (8, output_dim)
    assert jnp.allclose(out, ref, atol=TOL), "mismatch vs f32 reference (case 1)"
    assert jnp.allclose(jnp.sum(out, axis=-1), 1.0, atol=TOL), "rows do not sum to 1 (case 1)"

    # Case 2: ragged batch with an explicit small tile -> multi-step grid + padding.
    x2 = jax.random.normal(kx2, (41, encoded_dim), jnp.float32)
    out2 = jax.block_until_ready(decoder_forward(x2, params, block_b=16))
    ref2 = reference_forward(x2, params)
    assert out2.shape == (41, output_dim)
    assert jnp.allclose(out2, ref2, atol=TOL), "mismatch vs f32 reference (case 2)"
    assert jnp.allclose(jnp.sum(out2, axis=-1), 1.0, atol=TOL), "rows do not sum to 1 (case 2)"

    print("KERNEL_OK")
</pallas_src>

<mosaic_0001>
module attributes {stable_mosaic.version = 11 : i64} {
  func.func @decoder_kernel(%arg0: i32, %arg1: memref<8x2xf32, #tpu.memory_space<vmem>>, %arg2: memref<2x128xf32, #tpu.memory_space<vmem>>, %arg3: memref<1x128xf32, #tpu.memory_space<vmem>>, %arg4: memref<128x128xbf16, #tpu.memory_space<vmem>>, %arg5: memref<1x128xf32, #tpu.memory_space<vmem>>, %arg6: memref<128x256xbf16, #tpu.memory_space<vmem>>, %arg7: memref<1x256xf32, #tpu.memory_space<vmem>>, %arg8: memref<256x128xbf16, #tpu.memory_space<vmem>>, %arg9: memref<1x128xf32, #tpu.memory_space<vmem>>, %arg10: memref<8x128xbf16, #tpu.memory_space<vmem>>) attributes {dimension_semantics = [#tpu.dimension_semantics<parallel>], iteration_bounds = array<i64: 1>, scalar_prefetch = 0 : i64, scratch_operands = 0 : i64, tpu.core_type = #tpu.core_type<tc>, window_params = [{transform_indices = @transform_0, window_bounds = array<i64: 8, 2>}, {pipeline_mode = #tpu.pipeline_mode<synchronous>, transform_indices = @transform_1, window_bounds = array<i64: 2, 128>}, {pipeline_mode = #tpu.pipeline_mode<synchronous>, transform_indices = @transform_2, window_bounds = array<i64: 1, 128>}, {pipeline_mode = #tpu.pipeline_mode<synchronous>, transform_indices = @transform_3, window_bounds = array<i64: 128, 128>}, {pipeline_mode = #tpu.pipeline_mode<synchronous>, transform_indices = @transform_4, window_bounds = array<i64: 1, 128>}, {pipeline_mode = #tpu.pipeline_mode<synchronous>, transform_indices = @transform_5, window_bounds = array<i64: 128, 256>}, {pipeline_mode = #tpu.pipeline_mode<synchronous>, transform_indices = @transform_6, window_bounds = array<i64: 1, 256>}, {pipeline_mode = #tpu.pipeline_mode<synchronous>, transform_indices = @transform_7, window_bounds = array<i64: 256, 128>}, {pipeline_mode = #tpu.pipeline_mode<synchronous>, transform_indices = @transform_8, window_bounds = array<i64: 1, 128>}, {transform_indices = @transform_9, window_bounds = array<i64: 8, 128>}]} {
    %c0 = arith.constant 0 : index
    %c0_0 = arith.constant 0 : index
    %0 = vector.load %arg1[%c0, %c0_0] : memref<8x2xf32, #tpu.memory_space<vmem>>, vector<8x2xf32>
    %c0_1 = arith.constant 0 : index
    %c0_2 = arith.constant 0 : index
    %1 = vector.load %arg2[%c0_1, %c0_2] : memref<2x128xf32, #tpu.memory_space<vmem>>, vector<2x128xf32>
    %c0_3 = arith.constant 0 : index
    %c0_4 = arith.constant 0 : index
    %2 = vector.load %arg3[%c0_3, %c0_4] : memref<1x128xf32, #tpu.memory_space<vmem>>, vector<1x128xf32>
    %3 = vector.extract_strided_slice %0 {offsets = [0, 0], sizes = [8, 1], strides = [1, 1]} : vector<8x2xf32> to vector<8x1xf32>
    %4 = vector.extract_strided_slice %1 {offsets = [0, 0], sizes = [1, 128], strides = [1, 1]} : vector<2x128xf32> to vector<1x128xf32>
    %5 = vector.broadcast %3 : vector<8x1xf32> to vector<8x128xf32>
    %6 = vector.broadcast %4 : vector<1x128xf32> to vector<8x128xf32>
    %7 = arith.mulf %5, %6 : vector<8x128xf32>
    %8 = vector.broadcast %2 : vector<1x128xf32> to vector<8x128xf32>
    %9 = arith.addf %8, %7 : vector<8x128xf32>
    %10 = vector.extract_strided_slice %0 {offsets = [0, 1], sizes = [8, 1], strides = [1, 1]} : vector<8x2xf32> to vector<8x1xf32>
    %11 = vector.extract_strided_slice %1 {offsets = [1, 0], sizes = [1, 128], strides = [1, 1]} : vector<2x128xf32> to vector<1x128xf32>
    %12 = vector.broadcast %10 : vector<8x1xf32> to vector<8x128xf32>
    %13 = vector.broadcast %11 : vector<1x128xf32> to vector<8x128xf32>
    %14 = arith.mulf %12, %13 : vector<8x128xf32>
    %15 = arith.addf %9, %14 : vector<8x128xf32>
    %cst = arith.constant 0.000000e+00 : f32
    %16 = vector.broadcast %cst : f32 to vector<8x128xf32>
    %17 = arith.maximumf %15, %16 : vector<8x128xf32>
    %18 = arith.truncf %17 : vector<8x128xf32> to vector<8x128xbf16>
    %c0_5 = arith.constant 0 : index
    %c0_6 = arith.constant 0 : index
    %19 = vector.load %arg4[%c0_5, %c0_6] : memref<128x128xbf16, #tpu.memory_space<vmem>>, vector<128x128xbf16>
    %cst_7 = arith.constant dense<0.000000e+00> : vector<8x128xf32>
    %20 = tpu.matmul %18, %19, %cst_7 {dimension_numbers = #tpu.dot_dimension_numbers<[1], [0], [0], [1], [0, 0, 1, 1], [], []>} : vector<8x128xbf16>, vector<128x128xbf16>, vector<8x128xf32> -> vector<8x128xf32>
    %c0_8 = arith.constant 0 : index
    %c0_9 = arith.constant 0 : index
    %21 = vector.load %arg5[%c0_8, %c0_9] : memref<1x128xf32, #tpu.memory_space<vmem>>, vector<1x128xf32>
    %22 = vector.broadcast %21 : vector<1x128xf32> to vector<8x128xf32>
    %23 = arith.addf %20, %22 : vector<8x128xf32>
    %cst_10 = arith.constant 0.000000e+00 : f32
    %24 = vector.broadcast %cst_10 : f32 to vector<8x128xf32>
    %25 = arith.maximumf %23, %24 : vector<8x128xf32>
    %26 = arith.truncf %25 : vector<8x128xf32> to vector<8x128xbf16>
    %c0_11 = arith.constant 0 : index
    %c0_12 = arith.constant 0 : index
    %27 = vector.load %arg6[%c0_11, %c0_12] : memref<128x256xbf16, #tpu.memory_space<vmem>>, vector<128x256xbf16>
    %cst_13 = arith.constant dense<0.000000e+00> : vector<8x256xf32>
    %28 = tpu.matmul %26, %27, %cst_13 {dimension_numbers = #tpu.dot_dimension_numbers<[1], [0], [0], [1], [0, 0, 1, 1], [], []>} : vector<8x128xbf16>, vector<128x256xbf16>, vector<8x256xf32> -> vector<8x256xf32>
    %c0_14 = arith.constant 0 : index
    %c0_15 = arith.constant 0 : index
    %29 = vector.load %arg7[%c0_14, %c0_15] : memref<1x256xf32, #tpu.memory_space<vmem>>, vector<1x256xf32>
    %30 = vector.broadcast %29 : vector<1x256xf32> to vector<8x256xf32>
    %31 = arith.addf %28, %30 : vector<8x256xf32>
    %cst_16 = arith.constant 0.000000e+00 : f32
    %32 = vector.broadcast %cst_16 : f32 to vector<8x256xf32>
    %33 = arith.maximumf %31, %32 : vector<8x256xf32>
    %34 = arith.truncf %33 : vector<8x256xf32> to vector<8x256xbf16>
    %c0_17 = arith.constant 0 : index
    %c0_18 = arith.constant 0 : index
    %35 = vector.load %arg8[%c0_17, %c0_18] : memref<256x128xbf16, #tpu.memory_space<vmem>>, vector<256x128xbf16>
    %cst_19 = arith.constant dense<0.000000e+00> : vector<8x128xf32>
    %36 = tpu.matmul %34, %35, %cst_19 {dimension_numbers = #tpu.dot_dimension_numbers<[1], [0], [0], [1], [0, 0, 1, 1], [], []>} : vector<8x256xbf16>, vector<256x128xbf16>, vector<8x128xf32> -> vector<8x128xf32>
    %c0_20 = arith.constant 0 : index
    %c0_21 = arith.constant 0 : index
    %37 = vector.load %arg9[%c0_20, %c0_21] : memref<1x128xf32, #tpu.memory_space<vmem>>, vector<1x128xf32>
    %38 = vector.broadcast %37 : vector<1x128xf32> to vector<8x128xf32>
    %39 = arith.addf %36, %38 : vector<8x128xf32>
    %cst_22 = arith.constant dense<0xFF800000> : vector<8xf32>
    %40 = vector.multi_reduction <maximumf>, %39, %cst_22 [1] : vector<8x128xf32> to vector<8xf32>
    %41 = vector.shape_cast %40 : vector<8xf32> to vector<8x1xf32>
    %42 = vector.broadcast %41 : vector<8x1xf32> to vector<8x128xf32>
    %43 = arith.subf %39, %42 : vector<8x128xf32>
    %44 = math.exp %43 : vector<8x128xf32>
    %cst_23 = arith.constant dense<0.000000e+00> : vector<8xf32>
    %45 = vector.multi_reduction <add>, %44, %cst_23 [1] : vector<8x128xf32> to vector<8xf32>
    %46 = vector.shape_cast %45 : vector<8xf32> to vector<8x1xf32>
    %47 = vector.broadcast %46 : vector<8x1xf32> to vector<8x128xf32>
    %48 = arith.divf %44, %47 : vector<8x128xf32>
    %49 = arith.truncf %48 : vector<8x128xf32> to vector<8x128xbf16>
    %c0_24 = arith.constant 0 : index
    %c0_25 = arith.constant 0 : index
    %50 = vector.load %arg10[%c0_24, %c0_25] : memref<8x128xbf16, #tpu.memory_space<vmem>>, vector<8x128xbf16>
    tpu.vector_store %arg10[%c0_24, %c0_25], %49 {strides = array<i32>} : memref<8x128xbf16, #tpu.memory_space<vmem>>, vector<8x128xbf16>,
    return
  }
  func.func @transform_0(%arg0: i32) -> (i32, i32) {
    %c0_i32 = arith.constant 0 : i32
    %c0_i32_0 = arith.constant 0 : i32
    return %arg0, %c0_i32 : i32, i32
  }
  func.func @transform_1(%arg0: i32) -> (i32, i32) {
    %c0_i32 = arith.constant 0 : i32
    %c0_i32_0 = arith.constant 0 : i32
    %c0_i32_1 = arith.constant 0 : i32
    return %c0_i32, %c0_i32_0 : i32, i32
  }
  func.func @transform_2(%arg0: i32) -> (i32, i32) {
    %c0_i32 = arith.constant 0 : i32
    %c0_i32_0 = arith.constant 0 : i32
    %c0_i32_1 = arith.constant 0 : i32
    return %c0_i32, %c0_i32_0 : i32, i32
  }
  func.func @transform_3(%arg0: i32) -> (i32, i32) {
    %c0_i32 = arith.constant 0 : i32
    %c0_i32_0 = arith.constant 0 : i32
    %c0_i32_1 = arith.constant 0 : i32
    return %c0_i32, %c0_i32_0 : i32, i32
  }
  func.func @transform_4(%arg0: i32) -> (i32, i32) {
    %c0_i32 = arith.constant 0 : i32
    %c0_i32_0 = arith.constant 0 : i32
    %c0_i32_1 = arith.constant 0 : i32
    return %c0_i32, %c0_i32_0 : i32, i32
  }
  func.func @transform_5(%arg0: i32) -> (i32, i32) {
    %c0_i32 = arith.constant 0 : i32
    %c0_i32_0 = arith.constant 0 : i32
    %c0_i32_1 = arith.constant 0 : i32
    return %c0_i32, %c0_i32_0 : i32, i32
  }
  func.func @transform_6(%arg0: i32) -> (i32, i32) {
    %c0_i32 = arith.constant 0 : i32
    %c0_i32_0 = arith.constant 0 : i32
    %c0_i32_1 = arith.constant 0 : i32
    return %c0_i32, %c0_i32_0 : i32, i32
  }
  func.func @transform_7(%arg0: i32) -> (i32, i32) {
    %c0_i32 = arith.constant 0 : i32
    %c0_i32_0 = arith.constant 0 : i32
    %c0_i32_1 = arith.constant 0 : i32
    return %c0_i32, %c0_i32_0 : i32, i32
  }
  func.func @transform_8(%arg0: i32) -> (i32, i32) {
    %c0_i32 = arith.constant 0 : i32
    %c0_i32_0 = arith.constant 0 : i32
    %c0_i32_1 = arith.constant 0 : i32
    return %c0_i32, %c0_i32_0 : i32, i32
  }
  func.func @transform_9(%arg0: i32) -> (i32, i32) {
    %c0_i32 = arith.constant 0 : i32
    %c0_i32_0 = arith.constant 0 : i32
    return %arg0, %c0_i32 : i32, i32
  }
}

</mosaic_0001>

<bundles_post_ra>
// kernel: decoder_forward.1
= control target key start
LH: loop header
LB: loop body
LE: loop exit
PB: predicated region body
PF: predicated region fallthrough
CT: control target
= control target key end

     0   :  { %v667_v0 = vmov 0   ;;  %v668_v5 = vmov 1   ;;  %s908_s0 = inlined_call_operand.vmem [shape: f32[8,2], index: 0, kind: input, shape index: {}]   ;;  %s909_s3 = inlined_call_operand.vmem [shape: bf16[128,128], index: 3, kind: input, shape index: {}]   ;;  %s910_s2 = inlined_call_operand.vmem [shape: f32[1,128], index: 2, kind: input, shape index: {}]   ;;  %s911_s4 = inlined_call_operand.vmem [shape: f32[1,128], index: 4, kind: input, shape index: {}]   ;;  %s912_s5 = inlined_call_operand.vmem [shape: bf16[128,256], index: 5, kind: input, shape index: {}]   ;;  %s913_s1 = inlined_call_operand.vmem [shape: f32[2,128], index: 1, kind: input, shape index: {}]   ;;  %s914_s7 = inlined_call_operand.vmem [shape: bf16[256,128], index: 7, kind: input, shape index: {}]   ;;  %s915_s8 = inlined_call_operand.vmem [shape: f32[1,128], index: 8, kind: input, shape index: {}]   ;;  %s916_s6 = inlined_call_operand.vmem [shape: f32[1,256], index: 6, kind: input, shape index: {}]   ;;  %s917_s9 = inlined_call_operand.vmem [shape: bf16[8,128], index: 9, kind: output, shape index: {}]  }
   0x1   :  { %658 = vset.pattern.permute.xlu0 %v667_v0  ;;  %v32_v1 = vld [vmem:[%s908_s0] sm:$0xff]  ;;  %v623_v2 = vld [vmem:[%s909_s3 + $0x38] sm:$0xff]  ;;  %v622_v3 = vld [vmem:[%s909_s3 + $0x30] sm:$0xff] }
   0x2   :  { %37 = vperm.xlu0 %658, %v32_v1   ;;  %123 = vmatpush.bf16.msra.mxu0 %v623_v2  ;;  %v621_v4 = vld [vmem:[%s909_s3 + $0x28] sm:$0xff]  ;;  %v620_v6 = vld [vmem:[%s909_s3 + $0x20] sm:$0xff]  ;;  %v619_v7 = vld [vmem:[%s909_s3 + $0x18] sm:$0xff] }
   0x3   :  { %v618_v8 = vld [vmem:[%s909_s3 + $0x10] sm:$0xff]  ;;  %v617_v9 = vld [vmem:[%s909_s3 + $0x8] sm:$0xff]  ;;  %v616_v10 = vld [vmem:[%s909_s3] sm:$0xff] }
   0x4   :  { %v546_v11 = vld [vmem:[%s912_s5 + $0x70] sm:$0xf]  ;;  %v639_v12 = vld [vmem:[%s912_s5 + $0x74] sm:$0xf0]  ;;  %v638_v13 = vld [vmem:[%s912_s5 + $0x74] sm:$0xf] }
   0x5   :  { %v547_v14 = vor.u32 %v639_v12, %v546_v11  ;;  %v548_v15 = vld [vmem:[%s912_s5 + $0x78] sm:$0xf0]  ;;  %v538_v16 = vld [vmem:[%s912_s5 + $0x60] sm:$0xf]  ;;  %v637_v17 = vld [vmem:[%s912_s5 + $0x64] sm:$0xf0] }
   0x6   :  { %124 = vmatpush.bf16.msra.mxu0 %v622_v3  ;;  %v551_v18 = vor.u32 %v638_v13, %v548_v15  ;;  %v636_v19 = vld [vmem:[%s912_s5 + $0x64] sm:$0xf]  ;;  %v540_v20 = vld [vmem:[%s912_s5 + $0x68] sm:$0xf0]  ;;  %v539_v21 = vor.u32 %v637_v17, %v538_v16  ;;  %v530_v23 = vld [vmem:[%s912_s5 + $0x50] sm:$0xf] }
   0x7   :  { %240 = vmatpush.bf16.msra.mxu1 %v547_v14  ;;  %v543_v22 = vor.u32 %v636_v19, %v540_v20  ;;  %v635_v24 = vld [vmem:[%s912_s5 + $0x54] sm:$0xf0]  ;;  %v634_v25 = vld [vmem:[%s912_s5 + $0x54] sm:$0xf]  ;;  %v532_v26 = vld [vmem:[%s912_s5 + $0x58] sm:$0xf0] }
   0x8   :  { %253 = vmatpush.bf16.msra.mxu2 %v551_v18  ;;  %v531_v27 = vor.u32 %v635_v24, %v530_v23  ;;  %v535_v28 = vor.u32 %v634_v25, %v532_v26  ;;  %v522_v29 = vld [vmem:[%s912_s5 + $0x40] sm:$0xf]  ;;  %v633_v30 = vld [vmem:[%s912_s5 + $0x44] sm:$0xf0]  ;;  %v632_v31 = vld [vmem:[%s912_s5 + $0x44] sm:$0xf] }
   0x9   :  { %v524_v32 = vld [vmem:[%s912_s5 + $0x48] sm:$0xf0]  ;;  %v523_v33 = vor.u32 %v633_v30, %v522_v29  ;;  %v514_v35 = vld [vmem:[%s912_s5 + $0x30] sm:$0xf]  ;;  %v631_v36 = vld [vmem:[%s912_s5 + $0x34] sm:$0xf0] }
   0xa   :  { %659 = vset.pattern.permute.xlu0 %v668_v5  ;;  %125 = vmatpush.bf16.msra.mxu0 %v621_v4  ;;  %v527_v34 = vor.u32 %v632_v31, %v524_v32  ;;  %v33_v37 = vld [vmem:[%s913_s1] sm:$0x3]  ;;  %v630_v38 = vld [vmem:[%s912_s5 + $0x34] sm:$0xf]  ;;  %v516_v39 = vld [vmem:[%s912_s5 + $0x38] sm:$0xf0]  ;;  %v515_v41 = vor.u32 %v631_v36, %v514_v35 }
   0xb   :  { %47 = vperm.xlu0 %659, %v32_v1   ;;  %241 = vmatpush.bf16.msra.mxu1 %v539_v21  ;;  %v40_v42 = vperm.slane %v33_v37, 0  ;;  %v519_v43 = vor.u32 %v630_v38, %v516_v39  ;;  %v506_v44 = vld [vmem:[%s912_s5 + $0x20] sm:$0xf]  ;;  %v629_v45 = vld [vmem:[%s912_s5 + $0x24] sm:$0xf0]  ;;  %v50_v51 = vperm.slane %v33_v37, 1 }
   0xc   :  { %254 = vmatpush.bf16.msra.mxu2 %v543_v22  ;;  %v628_v46 = vld [vmem:[%s912_s5 + $0x24] sm:$0xf]  ;;  %v508_v47 = vld [vmem:[%s912_s5 + $0x28] sm:$0xf0]  ;;  %v507_v48 = vor.u32 %v629_v45, %v506_v44  ;;  %v660_v49 = vld [vmem:[%s910_s2] ss:$0 sm:$0xff] }
   0xd   :  { %v511_v52 = vor.u32 %v628_v46, %v508_v47  ;;  %v498_v59 = vld [vmem:[%s912_s5 + $0x10] sm:$0xf]  ;;  %v627_v60 = vld [vmem:[%s912_s5 + $0x14] sm:$0xf0]  ;;  %v626_v61 = vld [vmem:[%s912_s5 + $0x14] sm:$0xf] }
   0xe   :  { %126 = vmatpush.bf16.msra.mxu0 %v620_v6  ;;  %v499_v62 = vor.u32 %v627_v60, %v498_v59  ;;  %v500_v63 = vld [vmem:[%s912_s5 + $0x18] sm:$0xf0]  ;;  %v490_v1 = vld [vmem:[%s912_s5] sm:$0xf]  ;;  %v625_v2 = vld [vmem:[%s912_s5 + $0x4] sm:$0xf0] }
   0xf   :  { %242 = vmatpush.bf16.msra.mxu1 %v531_v27  ;;  %v503_v0 = vor.u32 %v626_v61, %v500_v63  ;;  %v624_v3 = vld [vmem:[%s912_s5 + $0x4] sm:$0xf]  ;;  %v491_v4 = vor.u32 %v625_v2, %v490_v1  ;;  %v492_v5 = vld [vmem:[%s912_s5 + $0x8] sm:$0xf0]  ;;  %v643_v15 = vld [vmem:[%s914_s7 + $0x18] sm:$0xff] }
  0x10   :  { %255 = vmatpush.bf16.msra.mxu2 %v535_v28  ;;  %v495_v6 = vor.u32 %v624_v3, %v492_v5  ;;  %v645_v11 = vld [vmem:[%s914_s7 + $0x28] sm:$0xff]  ;;  %v644_v13 = vld [vmem:[%s914_s7 + $0x20] sm:$0xff]  ;;  %v651_v16 = vld [vmem:[%s914_s7 + $0x58] sm:$0xff] }
  0x11   :  { %v653_v12 = vld [vmem:[%s914_s7 + $0x68] sm:$0xff]  ;;  %v652_v14 = vld [vmem:[%s914_s7 + $0x60] sm:$0xff]  ;;  %v642_v17 = vld [vmem:[%s914_s7 + $0x10] sm:$0xff] }
  0x12   :  { %127 = vmatpush.bf16.msra.mxu0 %v619_v7  ;;  %v647_v7 = vld [vmem:[%s914_s7 + $0x38] sm:$0xff]  ;;  %v661_v18 = vld [vmem:[%s911_s4] ss:$0 sm:$0xff]  ;;  %v641_v24 = vld [vmem:[%s914_s7 + $0x8] sm:$0xff] }
  0x13   :  { %243 = vmatpush.bf16.msra.mxu1 %v523_v33  ;;  %402 = vmatpush.bf16.msra.mxu3 %v647_v7  ;;  %v650_v25 = vld [vmem:[%s914_s7 + $0x50] sm:$0xff]  ;;  %v640_v26 = vld [vmem:[%s914_s7] sm:$0xff]  ;;  %v649_v27 = vld [vmem:[%s914_s7 + $0x48] sm:$0xff] }
  0x14   :  { %256 = vmatpush.bf16.msra.mxu2 %v527_v34  ;;  %v648_v28 = vld [vmem:[%s914_s7 + $0x40] sm:$0xff] }
  0x15   :  { %v154_v29 = vld [vmem:[%s916_s6] sm:$0x3] }
  0x16   :  { %128 = vmatpush.bf16.msra.mxu0 %v618_v8  ;;  %v655_v8 = vld [vmem:[%s914_s7 + $0x78] sm:$0xff]  ;;  %v156_v30 = vperm.slane %v154_v29, 0  ;;  %v157_v34 = vperm.slane %v154_v29, 1 }
  0x17   :  { %244 = vmatpush.bf16.msra.mxu1 %v515_v41 }
  0x18   :  { %257 = vmatpush.bf16.msra.mxu2 %v519_v43 }
  0x1a   :  { %129 = vmatpush.bf16.msra.mxu0 %v617_v9  ;;  %v646_v9 = vld [vmem:[%s914_s7 + $0x30] sm:$0xff] }
  0x1b   :  { %245 = vmatpush.bf16.msra.mxu1 %v507_v48  ;;  %403 = vmatpush.bf16.msra.mxu3 %v646_v9 }
  0x1c   :  { %258 = vmatpush.bf16.msra.mxu2 %v511_v52 }
  0x1e   :  { %130 = vmatpush.bf16.msra.mxu0 %v616_v10  ;;  %v654_v10 = vld [vmem:[%s914_s7 + $0x70] sm:$0xff] }
  0x1f   :  { %246 = vmatpush.bf16.msra.mxu1 %v499_v62  ;;  %404 = vmatpush.bf16.msra.mxu3 %v645_v11 }
  0x20   :  { %259 = vmatpush.bf16.msra.mxu2 %v503_v0 }
  0x22   :  { %415 = vmatpush.bf16.msrb.mxu0 %v655_v8 }
  0x23   :  { %247 = vmatpush.bf16.msra.mxu1 %v491_v4  ;;  %405 = vmatpush.bf16.msra.mxu3 %v644_v13 }
  0x24   :  { %260 = vmatpush.bf16.msra.mxu2 %v495_v6 }
  0x26   :  { %416 = vmatpush.bf16.msrb.mxu0 %v654_v10 }
  0x27   :  { %406 = vmatpush.bf16.msra.mxu3 %v643_v15 }
  0x2a   :  { %417 = vmatpush.bf16.msrb.mxu0 %v653_v12 }
  0x2b   :  { %407 = vmatpush.bf16.msra.mxu3 %v642_v17 }
  0x2e   :  { %418 = vmatpush.bf16.msrb.mxu0 %v652_v14 }
  0x2f   :  { %408 = vmatpush.bf16.msra.mxu3 %v641_v24 }
  0x32   :  { %419 = vmatpush.bf16.msrb.mxu0 %v651_v16 }
  0x33   :  { %409 = vmatpush.bf16.msra.mxu3 %v640_v26 }
  0x36   :  { %420 = vmatpush.bf16.msrb.mxu0 %v650_v25 }
  0x3a   :  { %421 = vmatpush.bf16.msrb.mxu0 %v649_v27 }
  0x3e   :  { %422 = vmatpush.bf16.msrb.mxu0 %v648_v28 }
  0x74   :  { %v38_v40 = vpop.permute.xlu0 %37 }
  0x75   :  { %v41_v50 = vmul.f32 %v40_v42, %v38_v40  ;;  %v662_v42 = vld [vmem:[%s915_s8] ss:$0 sm:$0xff] }
  0x77   :  { %v45_v54 = vadd.f32 %v660_v49, %v41_v50 }
  0x7d   :  { %v48_v53 = vpop.permute.xlu0 %47 }
  0x7e   :  { %v51_v55 = vmul.f32 %v50_v51, %v48_v53 }
  0x80   :  { %v52_v56 = vadd.f32 %v51_v55, %v45_v54 }
  0x82   :  { %v53_v57 = vmax.f32 %v52_v56, 0.0 }
  0x84   :  { %v54_v58 = vpack.c.bf16 %v53_v57, %v53_v57 }
  0x86   :  { %131 = vmatmul.bf16.vlgmr.msra.gmra.mxu0 %v54_v58 }
 0x103   :  { %v132_v19 = vpop.f32.mrf.mxu0 }
 0x104   :  { %v133_v20 = vadd.f32 %v661_v18, %v132_v19 }
 0x106   :  { %v136_v21 = vmax.f32 %v133_v20, 0.0 }
 0x108   :  { %v137_v22 = vpack.c.bf16 %v136_v21, %v136_v21 }
 0x10a   :  { %248 = vmatmul.bf16.vlgmr.msra.gmra.mxu1 %v137_v22  ;;  %261 = vmatmul.bf16.vlgmr.msra.gmra.mxu2 %v137_v22 }
 0x10b   :  { %v134_v23 = vpop.f32.mrf.mxu0 }
 0x187   :  { %v249_v31 = vpop.f32.mrf.mxu1 }
 0x188   :  { %v250_v32 = vadd.f32 %v249_v31, %v156_v30 }
 0x18a   :  { %v266_v33 = vmax.f32 %v250_v32, 0.0 }
 0x18c   :  { %v268_v35 = vpack.c.bf16 %v266_v33, %v266_v33 }
 0x18d   :  { %v262_v36 = vpop.f32.mrf.mxu2 }
 0x18e   :  { %v263_v37 = vadd.f32 %v262_v36, %v157_v34  ;;  %410 = vmatmul.bf16.vlgmr.msra.gmra.mxu3 %v268_v35 }
 0x18f   :  { %v251_v38 = vpop.f32.mrf.mxu1 }
 0x190   :  { %v267_v39 = vmax.f32 %v263_v37, 0.0 }
 0x192   :  { %v269_v40 = vpack.c.bf16 %v267_v39, %v267_v39 }
 0x194   :  { %423 = vmatmul.bf16.vlgmr.msrb.gmra.mxu0 %v269_v40 }
 0x195   :  { %v264_v41 = vpop.f32.mrf.mxu2 }
 0x211   :  { %v411_v43 = vpop.f32.mrf.mxu3  ;;  %v424_v44 = vpop.f32.mrf.mxu0 }
 0x212   :  { %v412_v45 = vadd.f32 %v662_v42, %v411_v43 }
 0x214   :  { %v425_v46 = vadd.f32 %v424_v44, %v412_v45 }
 0x216   :  { %428 = vmax.xlane.f32.xlu1 %v425_v46 }
 0x219   :  { %v413_v47 = vpop.f32.mrf.mxu3  ;;  %v426_v48 = vpop.f32.mrf.mxu0 }
 0x289   :  { %v429_v49 = vpop.xlane.xlu1 %428 }
 0x28a   :  { %v430_v50 = vsub.f32 %v425_v46, %v429_v49 }
 0x28c   :  { %v431_v51 = vmul.f32 1.442695, %v430_v50 }
 0x28e   :  { %663 = vpow2.f32 %v431_v51 }
 0x294   :  { %v664_v52 = vpop.eup %663 }
 0x295   :  { %433 = vadd.xlane.f32.xlu1 %v664_v52 }
 0x308   :  { %v434_v53 = vpop.xlane.xlu1 %433 }
 0x309   :  { %665 = vrcp.f32 %v434_v53  ;;  %v446_v57 = vand.u32 2147483648, %v434_v53  ;;  %v444_v59 = vand.u32 2147483647, %v434_v53  ;;  %vm440_vm1 = vweird.f32 %v434_v53 }
 0x30b   :  { %v447_v61 = vor.u32 1.1754944e-38, %v446_v57  ;;  %vm445_vm3 = vcmp.eq.f32.partialorder %v444_v59, 8.507059e+37 }
 0x30f   :  { %v666_v54 = vpop.eup %665 }
 0x310   :  { %v436_v55 = vmul.f32 %v666_v54, %v434_v53  ;;  %vm441_vm0 = vweird.f32 %v666_v54 }
 0x311   :  { %vm442_vm2 = vmor %vm440_vm1, %vm441_vm0 }
 0x312   :  { %v437_v56 = vsub.f32 1.0, %v436_v55 }
 0x314   :  { %v438_v58 = vmul.f32 %v666_v54, %v437_v56 }
 0x316   :  { %v439_v60 = vadd.f32 %v666_v54, %v438_v58 }
 0x318   :  { %v443_v62 = vsel %vm442_vm2, %v666_v54, %v439_v60 }
 0x319   :  { %v448_v63 = vsel %vm445_vm3, %v447_v61, %v443_v62 }
 0x31a   :  { %v449_v0 = vmul.f32 %v664_v52, %v448_v63 }
 0x31c   :  { %v450_v1 = vpack.c.bf16 %v449_v0, %v449_v0 }
 0x31e   :  { %451 = vst [vmem:[%s917_s9] sm:$0xf] %v450_v1 }

</bundles_post_ra>
